<compile_context>
chip_gen: v7x
topology: tpu7x:2x2x1
jax: 0.10.0
libtpu: 0.0.40
codegen_flags: <defaults>
</compile_context>

<pallas_src>
import jax
import jax.numpy as jnp
from jax.experimental import pallas as pl
from jax.experimental.pallas import tpu as pltpu


_STEP_BYTES_TARGET = 2 * 1024 * 1024    # ~2 MiB of input moved per grid step
_VMEM_LIMIT_BYTES = 32 * 1024 * 1024    # safe explicit scoped-VMEM cap on v5e/v6e/v7x
_TILE = 512                             # tile edge for the large-slice path (f32 sweet spot)


def _sublane_multiple(dtype) -> int:
    # Sublane packing granularity: f32 -> 8, bf16 -> 16, int8/fp8 -> 32.
    return max(8, 32 // jnp.dtype(dtype).itemsize)


def _pick_rows(n_rows, row_bytes, dtype):
    """How many (H, W) slices to fold into one grid step (~_STEP_BYTES_TARGET)."""
    if n_rows * row_bytes <= _STEP_BYTES_TARGET:
        return n_rows                       # whole array in one (or very few) steps
    m = _sublane_multiple(dtype)
    r = int(_STEP_BYTES_TARGET // max(row_bytes, 1))
    r = (r // m) * m                        # keep the 2-D output block sublane-aligned
    if r < m:
        return None                         # slices too big -> use the tiled path
    return min(r, n_rows)


# ----------------------------------------------------------------------------
# Fused, lane-dense path (small slices): (R, H, W) block -> (R, W*H) block.
# ----------------------------------------------------------------------------
def _fused_kernel_einshape(x_ref, o_ref):
    # Lane-layout-aware combined transpose+merge: out[r, w*H + h] = x[r, h, w].
    o_ref[...] = pltpu.einshape("bhw->b(wh)", x_ref[...])


def _fused_kernel_transpose_reshape(x_ref, o_ref):
    r, h, w = x_ref.shape
    o_ref[...] = jnp.swapaxes(x_ref[...], 1, 2).reshape(r, w * h)


def _call_fused(body, x2, rows):
    bc, h, w = x2.shape
    itemsize = jnp.dtype(x2.dtype).itemsize
    return pl.pallas_call(
        body,
        out_shape=jax.ShapeDtypeStruct((bc, w * h), x2.dtype),
        grid=(pl.cdiv(bc, rows),),
        in_specs=[pl.BlockSpec((rows, h, w), lambda i: (i, 0, 0))],
        out_specs=pl.BlockSpec((rows, w * h), lambda i: (i, 0)),
        compiler_params=pltpu.CompilerParams(
            dimension_semantics=("parallel",),
            vmem_limit_bytes=_VMEM_LIMIT_BYTES,
        ),
        cost_estimate=pl.CostEstimate(
            flops=0, transcendentals=0,
            bytes_accessed=2 * bc * h * w * itemsize),
    )(x2)


# ----------------------------------------------------------------------------
# Tiled-transpose path (large slices): (TH, TW) tile -> (TW, TH) tile with
# swapped output block indices.  Lane-dense whenever H >= 128 (TH >= 128).
# ----------------------------------------------------------------------------
def _tiled_transpose_kernel(x_ref, o_ref):
    # x_ref: (TH, TW), o_ref: (TW, TH) — the b*c dim is squeezed away.
    o_ref[...] = x_ref[...].T


def _call_tiled(x2):
    bc, h, w = x2.shape
    itemsize = jnp.dtype(x2.dtype).itemsize
    th = h if h <= _TILE else _TILE         # full-dim or a multiple of (8, 128)
    tw = w if w <= _TILE else _TILE
    return pl.pallas_call(
        _tiled_transpose_kernel,
        out_shape=jax.ShapeDtypeStruct((bc, w, h), x2.dtype),
        grid=(bc, pl.cdiv(h, th), pl.cdiv(w, tw)),
        in_specs=[pl.BlockSpec((pl.Squeezed(), th, tw), lambda b, i, j: (b, i, j))],
        out_specs=pl.BlockSpec((pl.Squeezed(), tw, th), lambda b, i, j: (b, j, i)),
        compiler_params=pltpu.CompilerParams(
            dimension_semantics=("parallel", "parallel", "parallel"),
            vmem_limit_bytes=_VMEM_LIMIT_BYTES,
        ),
        cost_estimate=pl.CostEstimate(
            flops=0, transcendentals=0,
            bytes_accessed=2 * bc * h * w * itemsize),
    )(x2)


# ----------------------------------------------------------------------------
# Dispatcher.
# ----------------------------------------------------------------------------
_FUSED_BODIES = (
    ("einshape", _fused_kernel_einshape),
    ("transpose_reshape", _fused_kernel_transpose_reshape),
)
_FAILED_FUSED = set()   # feature-detect Mosaic support for the in-tile relayout once


def multineck_shuffle_permute(x, n_heads):
    """x: (B, C, H, W) -> (B, C, n_heads, H*W // n_heads); matches
    torch.permute(x, (0, 1, 3, 2)).reshape(B, C, n_heads, -1)."""
    b, c, h, w = x.shape
    assert (h * w) % n_heads == 0, "n_heads must divide H*W"
    bc = b * c
    x2 = x.reshape(bc, h, w)                          # free view
    itemsize = jnp.dtype(x.dtype).itemsize
    rows = _pick_rows(bc, h * w * itemsize, x.dtype)

    flat = None
    if rows is not None:
        # Lane-dense fused path.  Probe the two equivalent in-kernel relayout
        # lowerings; if Mosaic rejects one, remember it and try the next.
        for name, body in _FUSED_BODIES:
            if name in _FAILED_FUSED:
                continue
            try:
                flat = jax.block_until_ready(_call_fused(body, x2, rows))
                break
            except Exception:  # lowering/compile rejection -> try next variant
                _FAILED_FUSED.add(name)
    if flat is None:
        # TODO(synk): if both fused relayout lowerings are rejected by Mosaic,
        # this tiled fallback keeps narrow (H-wide) stores for H < 128.
        flat = _call_tiled(x2).reshape(bc, w * h)     # free view

    return flat.reshape(b, c, n_heads, (w * h) // n_heads)   # free view


if __name__ == "__main__":
    key = jax.random.PRNGKey(0)

    # Small case (module's typical shapes) — exercises the fused lane-dense path.
    B, C, H, W = 2, 4, 16, 16
    n_heads = 4
    x = jax.random.normal(key, (B, C, H, W), dtype=jnp.float32)
    out = jax.block_until_ready(multineck_shuffle_permute(x, n_heads))
    ref = jnp.transpose(x, (0, 1, 3, 2)).reshape(B, C, n_heads, -1)
    assert out.shape == (B, C, n_heads, (W * H) // n_heads)
    assert jnp.array_equal(out, ref), "fused path mismatch vs reference"

    # Larger case — exercises the tiled-transpose path (per-slice bytes > 2 MiB).
    B2, C2, H2, W2, n_heads2 = 1, 2, 1024, 512, 8
    xl = jax.random.normal(jax.random.PRNGKey(0), (B2, C2, H2, W2), dtype=jnp.float32)
    outl = jax.block_until_ready(multineck_shuffle_permute(xl, n_heads2))
    refl = jnp.transpose(xl, (0, 1, 3, 2)).reshape(B2, C2, n_heads2, -1)
    assert jnp.array_equal(outl, refl), "tiled path mismatch vs reference"

    print("KERNEL_OK")
</pallas_src>

<mosaic_0001>
module attributes {stable_mosaic.version = 11 : i64} {
  func.func @_fused_kernel_transpose_reshape(%arg0: i32, %arg1: memref<8x16x16xf32, #tpu.memory_space<vmem>>, %arg2: memref<8x256xf32, #tpu.memory_space<vmem>>) attributes {dimension_semantics = [#tpu.dimension_semantics<parallel>], iteration_bounds = array<i64: 1>, scalar_prefetch = 0 : i64, scratch_operands = 0 : i64, tpu.core_type = #tpu.core_type<tc>, window_params = [{transform_indices = @transform_0, window_bounds = array<i64: 8, 16, 16>}, {transform_indices = @transform_1, window_bounds = array<i64: 8, 256>}]} {
    %c0 = arith.constant 0 : index
    %c0_0 = arith.constant 0 : index
    %c0_1 = arith.constant 0 : index
    %0 = vector.load %arg1[%c0, %c0_0, %c0_1] : memref<8x16x16xf32, #tpu.memory_space<vmem>>, vector<8x16x16xf32>
    %1 = tpu.transpose %0, [0, 2, 1] : vector<8x16x16xf32> -> vector<8x16x16xf32>
    %2 = vector.shape_cast %1 : vector<8x16x16xf32> to vector<8x256xf32>
    %c0_2 = arith.constant 0 : index
    %c0_3 = arith.constant 0 : index
    %3 = vector.load %arg2[%c0_2, %c0_3] : memref<8x256xf32, #tpu.memory_space<vmem>>, vector<8x256xf32>
    tpu.vector_store %arg2[%c0_2, %c0_3], %2 {strides = array<i32>} : memref<8x256xf32, #tpu.memory_space<vmem>>, vector<8x256xf32>,
    return
  }
  func.func @transform_0(%arg0: i32) -> (i32, i32, i32) {
    %c0_i32 = arith.constant 0 : i32
    %c0_i32_0 = arith.constant 0 : i32
    %c0_i32_1 = arith.constant 0 : i32
    return %arg0, %c0_i32, %c0_i32_0 : i32, i32, i32
  }
  func.func @transform_1(%arg0: i32) -> (i32, i32) {
    %c0_i32 = arith.constant 0 : i32
    %c0_i32_0 = arith.constant 0 : i32
    return %arg0, %c0_i32 : i32, i32
  }
}

module attributes {stable_mosaic.version = 11 : i64} {
  func.func @_tiled_transpose_kernel(%arg0: i32, %arg1: i32, %arg2: i32, %arg3: memref<1x16x16xf32, #tpu.memory_space<vmem>>, %arg4: memref<1x16x16xf32, #tpu.memory_space<vmem>>) attributes {dimension_semantics = [#tpu.dimension_semantics<parallel>, #tpu.dimension_semantics<parallel>, #tpu.dimension_semantics<parallel>], iteration_bounds = array<i64: 8, 1, 1>, scalar_prefetch = 0 : i64, scratch_operands = 0 : i64, tpu.core_type = #tpu.core_type<tc>, window_params = [{transform_indices = @transform_0, window_bounds = array<i64: 1, 16, 16>}, {transform_indices = @transform_1, window_bounds = array<i64: 1, 16, 16>}]} {
    %c0 = arith.constant 0 : index
    %c0_0 = arith.constant 0 : index
    %c0_1 = arith.constant 0 : index
    %0 = vector.load %arg3[%c0, %c0_0, %c0_1] : memref<1x16x16xf32, #tpu.memory_space<vmem>>, vector<1x16x16xf32>
    %1 = vector.shape_cast %0 : vector<1x16x16xf32> to vector<16x16xf32>
    %2 = tpu.transpose %1, [1, 0] : vector<16x16xf32> -> vector<16x16xf32>
    %c0_2 = arith.constant 0 : index
    %c0_3 = arith.constant 0 : index
    %c0_4 = arith.constant 0 : index
    %3 = vector.load %arg4[%c0_2, %c0_3, %c0_4] : memref<1x16x16xf32, #tpu.memory_space<vmem>>, vector<1x16x16xf32>
    %4 = vector.shape_cast %3 : vector<1x16x16xf32> to vector<16x16xf32>
    %5 = vector.shape_cast %2 : vector<16x16xf32> to vector<1x16x16xf32>
    tpu.vector_store %arg4[%c0_2, %c0_3, %c0_4], %5 {strides = array<i32>} : memref<1x16x16xf32, #tpu.memory_space<vmem>>, vector<1x16x16xf32>,
    return
  }
  func.func @transform_0(%arg0: i32, %arg1: i32, %arg2: i32) -> (i32, i32, i32) {
    %c0_i32 = arith.constant 0 : i32
    return %arg0, %arg1, %arg2 : i32, i32, i32
  }
  func.func @transform_1(%arg0: i32, %arg1: i32, %arg2: i32) -> (i32, i32, i32) {
    %c0_i32 = arith.constant 0 : i32
    return %arg0, %arg2, %arg1 : i32, i32, i32
  }
}

</mosaic_0001>

<bundles_post_ra>
// kernel: tpu_custom_call.1
= control target key start
LH: loop header
LB: loop body
LE: loop exit
PB: predicated region body
PF: predicated region fallthrough
CT: control target
= control target key end

     0   :  { %6 = vsyncpa [#allocation3], 0  ;;  %s824_s0 = inlined_call_operand.hbm [shape: f32[8,16,16], index: 0, kind: input, shape index: {}]   ;;  %s825_s1 = inlined_call_operand.hbm [shape: f32[8,256], index: 1, kind: output, shape index: {}]  }
   0x1   :  { %7 = vsyncpa [#allocation4], 0  ;;  %s723_s6 = smov [#allocation2]   ;;  %s675_s10 = scalar_lea.hbm %s824_s0, 2048 }
   0x2   :  { %s13_s7 = sshll.u32 %s723_s6, 4  ;;  %p676_p0 = scmp.ne.s32.totalorder %s824_s0, %s675_s10  ;;  %s14_s7 = int_to_ptr.vmem [resolvable:$true] %s13_s7 }
   0x3   :  { %p679_p1 = scmp.lt.u32.totalorder %s675_s10, %s824_s0 }
   0x5   :  { %p681_p2 = pnand %p679_p1, %p676_p0 }
   0x7   :  { %684 = shalt.err (!%p681_p2)
}
   0x8   :  { %s685_s15 = scalar_lea.vmem %s14_s7, 2048  ;;  %p690_p4 = scmp.lt.s32.totalorder %s14_s7, %s14_s7 }
   0x9   :  { %p686_p3 = scmp.ne.s32.totalorder %s14_s7, %s685_s15  ;;  %p691_p5 = scmp.lt.s32.totalorder %s685_s15, %s685_s15 }
   0xb   :  { %p692_p6 = por %p691_p5, %p690_p4 }
   0xd   :  { %p693_p7 = pnand %p692_p6, %p686_p3 }
   0xf   :  { %696 = shalt.err (!%p693_p7)
}
  0x10   :  { %s724_s16 = smov 128   ;;  %s725_s17 = smov 8  }
  0x11   :  { %19 = dma.hbm_to_vmem [thread:$0]  %s824_s0, 2048, %s14_s7, [#allocation3], %s724_s16, %s724_s16, %s725_s17  }
  0x12   :  { %719 = dma.done.wait [#allocation3], 2048  }
  0x13   :  { %720 = vsyncadd [#allocation3], 4294965248  ;;  %v25_v0 = vld [vmem:[#allocation2 + $0x10] sm:$0xff]  ;;  %v23_v1 = vld [vmem:[#allocation2] sm:$0xff]  ;;  %v726_v20 = vmov 1983009808   ;;  %v300_v22 = vlaneseq }
  0x14   :  { %71 = vxpose.xlu1.b32.start [1/2] (short) (narrow) %v25_v0, 16  ;;  %39 = vxpose.xlu0.b32.start [1/2] (short) (narrow) %v23_v1, 16  ;;  %v26_v2 = vld [vmem:[#allocation2 + $0x18] sm:$0xff]  ;;  %v24_v3 = vld [vmem:[#allocation2 + $0x8] sm:$0xff]  ;;  %v29_v4 = vld [vmem:[#allocation2 + $0x30] sm:$0xff]  ;;  %v298_v21 = vunpack.c.l.s4 %v726_v20  ;;  %s728_s0 = smov 32  }
  0x15   :  { %v27_v5 = vld [vmem:[#allocation2 + $0x20] sm:$0xff]  ;;  %v30_v6 = vld [vmem:[#allocation2 + $0x38] sm:$0xff]  ;;  %v28_v7 = vld [vmem:[#allocation2 + $0x28] sm:$0xff]  ;;  %v301_v26 = vshrl.u32 %v300_v22, 7  ;;  %v727_v29 = vmov 1934713408  }
  0x16   :  { %v33_v8 = vld [vmem:[#allocation2 + $0x50] sm:$0xff]  ;;  %v31_v9 = vld [vmem:[#allocation2 + $0x40] sm:$0xff]  ;;  %v34_v10 = vld [vmem:[#allocation2 + $0x58] sm:$0xff]  ;;  %v299_v25 = vunpack.c.0.s8 %v298_v21  ;;  %v362_v30 = vunpack.c.l.s4 %v727_v29  ;;  %s729_s20 = smov 16   ;;  %s730_s21 = smov 48   ;;  %vm623_vm0 = vcmask 130048  }
  0x17   :  { %v32_v11 = vld [vmem:[#allocation2 + $0x48] sm:$0xff]  ;;  %v37_v12 = vld [vmem:[#allocation2 + $0x70] sm:$0xff]  ;;  %v35_v13 = vld [vmem:[#allocation2 + $0x60] sm:$0xff]  ;;  %s731_s22 = smov 64   ;;  %s732_s23 = smov 80   ;;  %vm625_vm1 = vcmask 261120  }
  0x18   :  { %72 = vxpose.xlu1.b32.end [2/2] (short) (narrow) %v26_v2, 16  ;;  %40 = vxpose.xlu0.b32.end [2/2] (short) (narrow) %v24_v3, 16  ;;  %v38_v14 = vld [vmem:[#allocation2 + $0x78] sm:$0xff]  ;;  %v36_v15 = vld [vmem:[#allocation2 + $0x68] sm:$0xff]  ;;  %v302_v31 = vsub.s32 %v299_v25, %v301_v26  ;;  %v363_v36 = vunpack.c.0.s8 %v362_v30  ;;  %s733_s24 = smov 96   ;;  %s734_s25 = smov 112  }
  0x19   :  { %vm627_vm2 = vcmask 392192   ;;  %vm629_vm3 = vcmask 523264   ;;  %vm633_vm4 = vcmask 785408   ;;  %vm631_vm5 = vcmask 654336   ;;  %s735_s26 = smov [#allocation5]  }
  0x1a   :  { %v758_v44 = vsub.s32 %v363_v36, %v301_v26  ;;  %vm635_vm6 = vcmask 916480   ;;  %s652_s27 = sshll.u32 %s735_s26, 4  ;;  %s653_s27 = int_to_ptr.vmem [resolvable:$true] %s652_s27 }
  0x1b   :  { %s697_s28 = scalar_lea.vmem %s653_s27, 256  ;;  %p702_p9 = scmp.lt.s32.totalorder %s653_s27, %s653_s27 }
  0x1c   :  { %135 = vxpose.xlu1.b32.start [1/2] (short) (narrow) %v29_v4, 16  ;;  %103 = vxpose.xlu0.b32.start [1/2] (short) (narrow) %v27_v5, 16  ;;  %p698_p8 = scmp.ne.s32.totalorder %s653_s27, %s697_s28  ;;  %p703_p10 = scmp.lt.s32.totalorder %s697_s28, %s697_s28 }
  0x1e   :  { %p704_p11 = por %p703_p10, %p702_p9 }
  0x20   :  { %136 = vxpose.xlu1.b32.end [2/2] (short) (narrow) %v30_v6, 16  ;;  %104 = vxpose.xlu0.b32.end [2/2] (short) (narrow) %v28_v7, 16  ;;  %p705_p12 = pnand %p704_p11, %p698_p8 }
  0x24   :  { %199 = vxpose.xlu1.b32.start [1/2] (short) (narrow) %v33_v8, 16  ;;  %167 = vxpose.xlu0.b32.start [1/2] (short) (narrow) %v31_v9, 16 }
  0x28   :  { %200 = vxpose.xlu1.b32.end [2/2] (short) (narrow) %v34_v10, 16  ;;  %168 = vxpose.xlu0.b32.end [2/2] (short) (narrow) %v32_v11, 16 }
  0x2c   :  { %263 = vxpose.xlu1.b32.start [1/2] (short) (narrow) %v37_v12, 16  ;;  %231 = vxpose.xlu0.b32.start [1/2] (short) (narrow) %v35_v13, 16 }
  0x30   :  { %264 = vxpose.xlu1.b32.end [2/2] (short) (narrow) %v38_v14, 16  ;;  %232 = vxpose.xlu0.b32.end [2/2] (short) (narrow) %v36_v15, 16 }
  0x94   :  { %v87_v16 = vpop.trf.xlu1  ;;  %v55_v17 = vpop.trf.xlu0 }
  0x98   :  { %v88_v18 = vpop.trf.xlu1  ;;  %v56_v19 = vpop.trf.xlu0 }
  0x9c   :  { %v151_v23 = vpop.trf.xlu1  ;;  %v119_v24 = vpop.trf.xlu0 }
  0x9d   :  { %v311_v32 = vcombine.low %v87_v16, %v151_v23  ;;  %v295_v33 = vcombine.low %v55_v17, %v119_v24  ;;  %v312_v41 = vcombine.high %v87_v16, %v151_v23  ;;  %v296_v45 = vcombine.high %v55_v17, %v119_v24 }
  0x9f   :  { %v319_v37 = vrot.slane %v311_v32, %v302_v31  ;;  %v303_v38 = vrot.slane %v295_v33, %v302_v31  ;;  %v760_v55 = vrot.slane %v312_v41, %v302_v31  ;;  %v762_v61 = vrot.slane %v296_v45, %v302_v31 }
  0xa0   :  { %v152_v27 = vpop.trf.xlu1  ;;  %v120_v28 = vpop.trf.xlu0 }
  0xa1   :  { %v447_v42 = vcombine.low %v88_v18, %v152_v27  ;;  %v431_v43 = vcombine.low %v56_v19, %v120_v28  ;;  %v359_v46 = vcombine.low %v303_v38, %v319_v37  ;;  %v360_v47 = vcombine.high %v303_v38, %v319_v37 }
  0xa2   :  { %v448_v48 = vcombine.high %v88_v18, %v152_v27  ;;  %v432_v56 = vcombine.high %v56_v19, %v120_v28  ;;  %v375_v26 = vcombine.low %v762_v61, %v760_v55 }
  0xa3   :  { %v455_v57 = vrot.slane %v447_v42, %v302_v31  ;;  %v439_v58 = vrot.slane %v431_v43, %v302_v31  ;;  %v374_v1 = vrot.slane %v360_v47, %v758_v44  ;;  %v768_v2 = vrot.slane %v359_v46, %v758_v44 }
  0xa4   :  { %v215_v34 = vpop.trf.xlu1  ;;  %v183_v35 = vpop.trf.xlu0  ;;  %v764_v62 = vrot.slane %v448_v48, %v302_v31  ;;  %v446_v11 = vrot.slane %v432_v56, %v302_v31  ;;  %v383_v37 = vrot.slane %v375_v26, %v758_v44 }
  0xa5   :  { %v496_v12 = vcombine.high %v439_v58, %v455_v57  ;;  %v495_v19 = vcombine.low %v439_v58, %v455_v57 }
  0xa6   :  { %v511_v27 = vcombine.low %v446_v11, %v764_v62  ;;  %v512_v43 = vcombine.high %v446_v11, %v764_v62 }
  0xa7   :  { %v510_v28 = vrot.slane %v496_v12, %v758_v44  ;;  %v503_v33 = vrot.slane %v495_v19, %v758_v44 }
  0xa8   :  { %v216_v39 = vpop.trf.xlu1  ;;  %v184_v40 = vpop.trf.xlu0  ;;  %v526_v48 = vrot.slane %v512_v43, %v758_v44 }
  0xac   :  { %v279_v49 = vpop.trf.xlu1  ;;  %v247_v50 = vpop.trf.xlu0 }
  0xad   :  { %v343_v51 = vcombine.low %v215_v34, %v279_v49  ;;  %v344_v52 = vcombine.high %v215_v34, %v279_v49  ;;  %v327_v53 = vcombine.low %v183_v35, %v247_v50  ;;  %v328_v54 = vcombine.high %v183_v35, %v247_v50 }
  0xaf   :  { %v351_v59 = vrot.slane %v343_v51, %v302_v31  ;;  %v335_v60 = vrot.slane %v327_v53, %v302_v31  ;;  %v770_v3 = vrot.slane %v344_v52, %v302_v31  ;;  %v772_v4 = vrot.slane %v328_v54, %v302_v31 }
  0xb0   :  { %v280_v63 = vpop.trf.xlu1  ;;  %v248_v0 = vpop.trf.xlu0  ;;  %v376_v52 = vcombine.high %v762_v61, %v760_v55 }
  0xb1   :  { %v391_v5 = vcombine.low %v335_v60, %v351_v59  ;;  %v392_v6 = vcombine.high %v335_v60, %v351_v59  ;;  %v479_v7 = vcombine.low %v216_v39, %v280_v63  ;;  %v480_v8 = vcombine.high %v216_v39, %v280_v63 }
  0xb2   :  { %v463_v9 = vcombine.low %v184_v40, %v248_v0  ;;  %v464_v10 = vcombine.high %v184_v40, %v248_v0  ;;  %v407_v20 = vcombine.low %v772_v4, %v770_v3  ;;  %v519_v39 = vrot.slane %v511_v27, %v758_v44 }
  0xb3   :  { %v406_v13 = vrot.slane %v392_v6, %v758_v44  ;;  %v776_v14 = vrot.slane %v391_v5, %v758_v44  ;;  %v487_v15 = vrot.slane %v479_v7, %v302_v31  ;;  %v494_v16 = vrot.slane %v480_v8, %v302_v31 }
  0xb4   :  { %v471_v17 = vrot.slane %v463_v9, %v302_v31  ;;  %v478_v18 = vrot.slane %v464_v10, %v302_v31  ;;  %v415_v32 = vrot.slane %v407_v20, %v758_v44  ;;  %v408_v49 = vcombine.high %v772_v4, %v770_v3 }
  0xb5   :  { %v425_v21 = vcombine.low %v374_v1, %v406_v13  ;;  %v424_v22 = vcombine.high %v768_v2, %v776_v14  ;;  %v426_v31 = vcombine.high %v374_v1, %v406_v13  ;;  %v423_v34 = vcombine.low %v768_v2, %v776_v14 }
  0xb6   :  { %v527_v23 = vcombine.low %v471_v17, %v487_v15  ;;  %v528_v24 = vcombine.high %v471_v17, %v487_v15  ;;  %v543_v25 = vcombine.low %v478_v18, %v494_v16  ;;  %v427_v40 = vcombine.low %v383_v37, %v415_v32 }
  0xb7   :  { %572 = vrot.lane.b32.xlu1 %v425_v21, %s728_s0  ;;  %568 = vrot.lane.b32.xlu0 %v424_v22, %s729_s20  ;;  %v544_v41 = vcombine.high %v478_v18, %v494_v16  ;;  %v428_v45 = vcombine.high %v383_v37, %v415_v32  ;;  %v422_v54 = vrot.slane %v408_v49, %v758_v44 }
  0xb8   :  { %v542_v29 = vrot.slane %v528_v24, %v758_v44  ;;  %v535_v30 = vrot.slane %v527_v23, %v758_v44  ;;  %v551_v36 = vrot.slane %v543_v25, %v758_v44  ;;  %v390_v57 = vrot.slane %v376_v52, %v758_v44 }
  0xb9   :  { %v558_v47 = vrot.slane %v544_v41, %v758_v44 }
  0xba   :  { %v562_v35 = vcombine.high %v510_v28, %v542_v29  ;;  %v559_v38 = vcombine.low %v503_v33, %v535_v30  ;;  %v563_v42 = vcombine.low %v519_v39, %v551_v36  ;;  %v564_v46 = vcombine.high %v519_v39, %v551_v36 }
  0xbb   :  { %576 = vrot.lane.b32.xlu1 %v426_v31, %s730_s21  ;;  %v560_v50 = vcombine.high %v503_v33, %v535_v30  ;;  %v565_v51 = vcombine.low %v526_v48, %v558_v47  ;;  %v561_v53 = vcombine.low %v510_v28, %v542_v29  ;;  %v566_v56 = vcombine.high %v526_v48, %v558_v47 }
  0xbc   :  { %604 = vrot.lane.b32.xlu0 %v562_v35, %s730_s21  ;;  %v429_v58 = vcombine.low %v390_v57, %v422_v54  ;;  %v430_v59 = vcombine.high %v390_v57, %v422_v54 }
  0xbf   :  { %580 = vrot.lane.b32.xlu1 %v427_v40, %s731_s22 }
  0xc0   :  { %608 = vrot.lane.b32.xlu0 %v563_v42, %s731_s22 }
  0xc3   :  { %584 = vrot.lane.b32.xlu1 %v428_v45, %s732_s23 }
  0xc4   :  { %612 = vrot.lane.b32.xlu0 %v564_v46, %s732_s23 }
  0xc7   :  { %596 = vrot.lane.b32.xlu1 %v560_v50, %s729_s20 }
  0xc8   :  { %616 = vrot.lane.b32.xlu0 %v565_v51, %s733_s24 }
  0xcb   :  { %600 = vrot.lane.b32.xlu1 %v561_v53, %s728_s0 }
  0xcc   :  { %620 = vrot.lane.b32.xlu0 %v566_v56, %s734_s25 }
  0xcf   :  { %588 = vrot.lane.b32.xlu1 %v429_v58, %s733_s24 }
  0xd3   :  { %592 = vrot.lane.b32.xlu1 %v430_v59, %s734_s25 }
 0x129   :  { %v573_v60 = vpop.permute.xlu1 %572  ;;  %v569_v55 = vpop.permute.xlu0 %568 }
 0x12a   :  { %v624_v6 = vsel %vm623_vm0, %v423_v34, %v569_v55 }
 0x12b   :  { %v626_v10 = vsel %vm625_vm1, %v624_v6, %v573_v60 }
 0x12d   :  { %v577_v61 = vpop.permute.xlu1 %576 }
 0x12e   :  { %v605_v62 = vpop.permute.xlu0 %604  ;;  %v628_v13 = vsel %vm627_vm2, %v626_v10, %v577_v61 }
 0x131   :  { %v581_v63 = vpop.permute.xlu1 %580 }
 0x132   :  { %v609_v0 = vpop.permute.xlu0 %608  ;;  %v630_v16 = vsel %vm629_vm3, %v628_v13, %v581_v63 }
 0x135   :  { %v585_v1 = vpop.permute.xlu1 %584 }
 0x136   :  { %v613_v2 = vpop.permute.xlu0 %612  ;;  %v632_v18 = vsel %vm631_vm5, %v630_v16, %v585_v1 }
 0x139   :  { %v597_v3 = vpop.permute.xlu1 %596 }
 0x13a   :  { %v617_v4 = vpop.permute.xlu0 %616  ;;  %v637_v5 = vsel %vm623_vm0, %v559_v38, %v597_v3 }
 0x13d   :  { %v601_v44 = vpop.permute.xlu1 %600 }
 0x13e   :  { %v638_v7 = vsel %vm625_vm1, %v637_v5, %v601_v44  ;;  %v621_v15 = vpop.permute.xlu0 %620 }
 0x13f   :  { %v639_v8 = vsel %vm627_vm2, %v638_v7, %v605_v62 }
 0x140   :  { %v640_v9 = vsel %vm629_vm3, %v639_v8, %v609_v0 }
 0x141   :  { %v641_v11 = vsel %vm631_vm5, %v640_v9, %v613_v2  ;;  %v589_v12 = vpop.permute.xlu1 %588 }
 0x142   :  { %v642_v14 = vsel %vm633_vm4, %v641_v11, %v617_v4  ;;  %v634_v19 = vsel %vm633_vm4, %v632_v18, %v589_v12 }
 0x143   :  { %v643_v17 = vsel %vm635_vm6, %v642_v14, %v621_v15 }
 0x144   :  { %645 = vst [vmem:[#allocation5 + $0x8] sm:$0xff] %v643_v17 }
 0x145   :  { %v593_v20 = vpop.permute.xlu1 %592 }
 0x146   :  { %v636_v21 = vsel %vm635_vm6, %v634_v19, %v593_v20 }
 0x147   :  { %644 = vst [vmem:[#allocation5] sm:$0xff] %v636_v21 }
 0x148   :  { %708 = shalt.err (!%p705_p12)
}
 0x149   :  { %s709_s2 = scalar_lea.hbm %s825_s1, 256 }
 0x14a   :  { %p710_p13 = scmp.ne.s32.totalorder %s825_s1, %s709_s2  ;;  %p713_p0 = scmp.lt.u32.totalorder %s709_s2, %s825_s1 }
 0x14c   :  { %p715_p1 = pnand %p713_p0, %p710_p13 }
 0x14e   :  { %718 = shalt.err (!%p715_p1)
}
 0x14f   :  { %655 = dma.vmem_to_hbm [thread:$0]  %s653_s27, 256, %s825_s1, [#allocation4]  }
 0x150   :  { %721 = dma.done.wait [#allocation4], 256  }
 0x151   :  { %722 = vsyncadd [#allocation4], 4294967040 }
 0x152   :  { %659 = vsyncpa [#allocation3], 1 }
 0x153   :  { %660 = vsyncpa [#allocation4], 1 }

// kernel: tpu_custom_call.1
= control target key start
LH: loop header
LB: loop body
LE: loop exit
PB: predicated region body
PF: predicated region fallthrough
CT: control target
= control target key end

     0   :  { %6 = vsyncpa [#allocation3], 0  ;;  %s700_s0 = inlined_call_operand.hbm [shape: f32[8,16,16], index: 0, kind: input, shape index: {}]   ;;  %s701_s1 = inlined_call_operand.hbm [shape: f32[8,16,16], index: 1, kind: output, shape index: {}]  }
   0x1   :  { %8 = vsyncpa [#allocation3 + $0x1], 0 }
   0x2   :  { %9 = vsyncpa [#allocation4], 0 }
   0x3   :  { %11 = vsyncpa [#allocation4 + $0x1], 0  ;;  %s527_s6 = smov 0   ;;  %s529_s7 = smov 0  }
   0x4   :  { %s531_s8 = smov 0   ;;  %s533_s9 = smov 0  }
   0x5   :  { %s535_s10 = smov 0   ;;  %s537_s11 = smov 0  }
   0x6 LB: > { %s313_s12 = sadd.s32 4294967295, %s509_s11   ;;  %s314_s13 = sadd.s32 4294967294, %s509_s11   ;;  %s509_s11 = sphi %s537_s11, %s17_s11   ;;  %s505_s10 = sphi %s535_s10, %s715_s10   ;;  %s501_s9 = sphi %s533_s9, %s714_s9   ;;  %s497_s8 = sphi %s531_s8, %s713_s8   ;;  %s493_s7 = sphi %s529_s7, %s712_s7   ;;  %s489_s6 = sphi %s527_s6, %s711_s6  }
   0x7   : > { %s36_s14 = sadd.s32 1, %s505_s10  ;;  %s47_s15 = sadd.s32 1, %s497_s8 }
   0x8   : > { %p38_p0 = scmp.ge.s32.totalorder %s36_s14, 8  ;;  %p54_p1 = scmp.ne.s32.totalorder %s497_s8, %s493_s7 }
   0x9   : > { %p55_p2 = scmp.eq.s32.totalorder %s509_s11, 0  ;;  %p60_p3 = scmp.ne.s32.totalorder %s493_s7, %s489_s6 }
   0xa   : > { %s717_s14 = smov (%p38_p0, %s36_s14), 0  ;;  %p61_p5 = scmp.eq.s32.totalorder %s313_s12, 0 }
   0xb   : > { %p568_p4 = por %p55_p2, %p54_p1  ;;  %s40_s17 = ssub.s32 %s505_s10, %s717_s14 }
   0xc   : > { %p88_p6 = scmp.eq.s32.totalorder %s313_s12, 7  ;;  %p45_p7 = scmp.eq.s32.totalorder %s40_s17, 0 }
   0xd   : > { %p574_p8 = por %p61_p5, %p60_p3  ;;  %p94_p10 = scmp.eq.s32.totalorder %s314_s13, 7 }
   0xe   : > { %p578_p9 = por %p88_p6, %p54_p1  ;;  %p342_p12 = scmp.lt.s32.totalorder %s509_s11, 8 }
   0xf   : > { %s583_s20 = scalar_select %p45_p7, %s497_s8, %s47_s15  }
  0x10   : > { %s705_s19 = scalar_select %p578_p9, 1, 0 }
  0x11   : > { %p585_p11 = por %p94_p10, %p60_p3  ;;  %s114_s22 = sand.u32 1, %s497_s8  }
  0x12   : > { %s317_s23 = sshll.u32 %s114_s22, 4  ;;  %s328_s24 = sshll.u32 %s505_s10, 8 }
  0x13   : > { %s706_s21 = scalar_select %p585_p11, 1, 0 }
  0x14   : > { %s595_s27 = scalar_lea.hbm %s700_s0, %s328_s24  ;;  %s118_s28 = scalar_lea.vmem [#allocation2], %s317_s23 }
  0x15   : > { %s128_s29 = sshll.u32 %s118_s28, 4  ;;  %p601_p13 = pnand %p342_p12, %p568_p4  ;;  %s597_s29 = int_to_ptr.vmem [resolvable:$true] %s128_s29 }
  0x16   : > { %s606_s2 = scalar_lea.sflag [#allocation3], %s114_s22  ;;  %s397_s3 = scalar_lea.hbm %s595_s27, 256 }
  0x17   : > { %p398_p1 = scmp.ne.s32.totalorder %s595_s27, %s397_s3  ;;  %p399_p2 = pneg %p601_p13 }
  0x18   : > { %s402_s12 = scalar_lea.hbm %s700_s0, 2048  ;;  %p403_p4 = scmp.lt.u32.totalorder %s595_s27, %s700_s0 }
  0x19   : > { %p400_p3 = pnand %p399_p2, %p398_p1  ;;  %p404_p6 = scmp.lt.u32.totalorder %s402_s12, %s397_s3 }
  0x1a   : > { %p406_p10 = scmp.lt.u32.totalorder %s397_s3, %s595_s27 }
  0x1b   : > { %p401_p5 = pneg %p400_p3  ;;  %p405_p7 = por %p404_p6, %p403_p4 }
  0x1d   : > { %p407_p12 = por %p406_p10, %p405_p7 }
  0x1f   : > { %p408_p0 = pnand %p407_p12, %p401_p5 }
  0x21   : > { %411 = shalt.err (!%p408_p0)
}
  0x22   : > { %s412_s16 = scalar_lea.vmem %s597_s29, 256  ;;  %s511_s17 = smov [#allocation2]  }
  0x23   : > { %p413_p1 = scmp.ne.s32.totalorder %s597_s29, %s412_s16  ;;  %s417_s22 = sshll.u32 %s511_s17, 4  ;;  %s418_s22 = int_to_ptr.vmem [resolvable:$false] %s417_s22 }
  0x24   : > { %s419_s23 = scalar_lea.vmem %s418_s22, 512  ;;  %p420_p9 = scmp.lt.s32.totalorder %s597_s29, %s418_s22 }
  0x25   : > { %p415_p3 = pnand %p413_p1, %p399_p2  ;;  %p421_p4 = scmp.lt.s32.totalorder %s419_s23, %s412_s16 }
  0x27   : > { %p416_p11 = pneg %p415_p3  ;;  %p422_p6 = por %p421_p4, %p420_p9 }
  0x29   : > { %p423_p7 = pnand %p422_p6, %p416_p11 }
  0x2b   : > { %426 = shalt.err (!%p423_p7)
}
  0x2c   : > { %s512_s24 = smov 128   ;;  %s513_s25 = smov 8  }
  0x2d   : > { %337 = dma.hbm_to_vmem [thread:$0]  (!%p601_p13), %s595_s27, 256, %s597_s29, %s606_s2, %s512_s24, %s512_s24, %s513_s25  }
  0x2e   : > { %p136_p0 = scmp.lt.s32.totalorder %s509_s11, 9  ;;  %p708_p2 = scmp.ge.s32.totalorder %s509_s11, 1 }
  0x30   : > { %p137_p5 = pnand %p708_p2, %p136_p0 }
  0x31   : > { %s638_s26 = sand.u32 (!%p137_p5), 1, %s493_s7  }
  0x32   : > { %140 = sbr.rel (%p137_p5) target bundleno = 207 (0xcf), region = 24  ;;  %s321_s28 = sshll.u32 (!%p137_p5), %s638_s26, 4 }
  0x33   : > { %s143_s3 = scalar_lea.sflag (!%p137_p5), [#allocation3], %s638_s26  ;;  %s146_s4 = scalar_lea.vmem (!%p137_p5), [#allocation2], %s321_s28 }
  0x39   : > { %480 = dma.done.wait (%p574_p8), %s143_s3, 256  }
  0x3a   : > { %482 = vsyncadd (%p574_p8), %s143_s3, 4294967040  ;;  %v167_v0 = vld [vmem:[%s146_s4] sm:$0xff]  ;;  %v168_v1 = vld [vmem:[%s146_s4 + $0x8] sm:$0xff]  ;;  %vm201_vm0 = vcmask 130048   ;;  %s164_s27 = scalar_lea.vmem [#allocation5], %s321_s28  ;;  %s329_s30 = sshll.u32 %s501_s9, 8 }
  0x3b   : > { %169 = vxpose.xlu0.b32.start [1/2] (short) (narrow) %v167_v0, 16  ;;  %s221_s29 = sshll.u32 %s164_s27, 4  ;;  %s652_s5 = scalar_lea.hbm %s701_s1, %s329_s30  ;;  %s647_s29 = int_to_ptr.vmem [resolvable:$true] %s221_s29 }
  0x3c   : > { %s205_s12 = scalar_lea.sflag [#allocation4], %s638_s26  ;;  %s427_s13 = scalar_lea.vmem %s647_s29, 256 }
  0x3d   : > { %p428_p8 = scmp.ne.s32.totalorder %s647_s29, %s427_s13  ;;  %p709_p9 = scmp.ne.s32.totalorder %s705_s19, 0 }
  0x3e   : > { %s514_s9 = smov [#allocation5]  }
  0x3f   : > { %170 = vxpose.xlu0.b32.end [2/2] (short) (narrow) %v168_v1, 16  ;;  %p429_p11 = pnand %p428_p8, %p709_p9  ;;  %s431_s15 = sshll.u32 %s514_s9, 4  ;;  %s432_s15 = int_to_ptr.vmem [resolvable:$false] %s431_s15 }
  0x40   : > { %s433_s16 = scalar_lea.vmem %s432_s15, 512  ;;  %p434_p10 = scmp.lt.s32.totalorder %s647_s29, %s432_s15 }
  0x41   : > { %p430_p13 = pneg %p429_p11  ;;  %p435_p12 = scmp.lt.s32.totalorder %s433_s16, %s427_s13 }
  0x43   : > { %p436_p1 = por %p435_p12, %p434_p10 }
  0x45   : > { %p437_p3 = pnand %p436_p1, %p430_p13 }
  0xbb   : > { %v185_v2 = vpop.trf.xlu0 }
  0xbc   : > { %202 = vst.msk [vmem:[%s164_s27] sm:$0xff] %vm201_vm0, %v185_v2 }
  0xbf   : > { %v186_v3 = vpop.trf.xlu0 }
  0xc0   : > { %203 = vst.msk [vmem:[%s164_s27 + $0x8] sm:$0xff] %vm201_vm0, %v186_v3 }
  0xc1   : > { %440 = shalt.err (!%p437_p3)
}
  0xc2   : > { %s441_s17 = scalar_lea.hbm %s652_s5, 256  ;;  %s445_s24 = scalar_lea.hbm %s701_s1, 2048 }
  0xc3   : > { %p442_p4 = scmp.ne.s32.totalorder %s652_s5, %s441_s17  ;;  %p446_p0 = scmp.lt.u32.totalorder %s652_s5, %s701_s1 }
  0xc4   : > { %p447_p2 = scmp.lt.u32.totalorder %s445_s24, %s441_s17  ;;  %p449_p8 = scmp.lt.u32.totalorder %s441_s17, %s652_s5 }
  0xc5   : > { %p443_p6 = pnand %p442_p4, %p709_p9 }
  0xc6   : > { %p448_p5 = por %p447_p2, %p446_p0 }
  0xc7   : > { %p444_p7 = pneg %p443_p6 }
  0xc8   : > { %p450_p11 = por %p449_p8, %p448_p5 }
  0xca   : > { %p451_p13 = pnand %p450_p11, %p444_p7 }
  0xcc   : > { %454 = shalt.err (!%p451_p13)
}
  0xcd   : > { %s515_s3 = smov 128   ;;  %s516_s4 = smov 8  }
  0xce   : > { %332 = dma.vmem_to_hbm [thread:$0]  (%p709_p9), %s647_s29, 256, %s652_s5, %s205_s12, %s515_s3, %s515_s3, %s516_s4  }
  0xcf PF: > { %p343_p10 = scmp.ge.s32.totalorder %s509_s11, 2  ;;  %s236_s27 = sand.u32 1, %s489_s6  }
  0xd0   : > { %p710_p12 = scmp.ne.s32.totalorder %s706_s21, 0  ;;  %s237_s30 = scalar_lea.sflag [#allocation4], %s236_s27 }
  0xd2   : > { %p339_p1 = pnand %p343_p10, %p710_p12 }
  0xd4   : > { %484 = dma.done.wait (!%p339_p1), %s237_s30, 256  }
  0xd5   : > { %486 = vsyncadd (!%p339_p1), %s237_s30, 4294967040  ;;  %s17_s11 = sadd.s32 1, %s509_s11   ;;  %s711_s6 = smov %s493_s7 }
  0xd6   : > { %p14_p3 = scmp.ge.s32.totalorder %s17_s11, 10   ;;  %s712_s7 = smov %s497_s8 }
  0xd7   : > { %s713_s8 = smov %s583_s20  ;;  %s714_s9 = smov %s505_s10 }
  0xd8   : > { %s715_s10 = smov %s717_s14  ;;  %16 = sbr.rel (!%p14_p3) target bundleno = 6 (0x6), region = 69 }
  0xdf   :  { %242 = vsyncpa [#allocation3], 1 }
  0xe0   :  { %244 = vsyncpa [#allocation3 + $0x1], 1 }
  0xe1   :  { %245 = vsyncpa [#allocation4], 1 }
  0xe2   :  { %247 = vsyncpa [#allocation4 + $0x1], 1 }

</bundles_post_ra>
